<compile_context>
chip_gen: v7x
topology: tpu7x:2x2x1
jax: 0.10.0
libtpu: 0.0.40
codegen_flags: <defaults>
</compile_context>

<pallas_src>
import jax
import jax.numpy as jnp
import numpy as np
from jax import lax
from jax.experimental import pallas as pl
from jax.experimental.pallas import tpu as pltpu

_MIB = 1024 * 1024


def _round_up(x, m):
    return ((x + m - 1) // m) * m


def _vmem_capacity_bytes():
    try:
        return int(pltpu.get_tpu_info().vmem_capacity_bytes)
    except Exception:
        return 64 * _MIB  # conservative (v7x per-core size)


def _default_block_b():
    """Per-generation default batch tile."""
    try:
        kind = jax.devices()[0].device_kind.lower()
    except Exception:
        return 512
    if "v6" in kind:
        return 1024   # 128 MiB VMEM + 256-wide MXU: big M tiles amortize step cost
    if "v5" in kind:
        return 512    # HBM-roofline bound; 256-512 already saturates the 128-wide MXU
    return 512        # v7x / unknown: 64 MiB per-core VMEM, rely on the 2 TCs


def _make_pff_fused_kernel(num_layers):
    """Fused kernel body: refs are (x, w0, b0, w1, b1, ..., o0, o1, ...)."""

    def kernel(*refs):
        x_ref = refs[0]
        w_refs = [refs[1 + 2 * i] for i in range(num_layers)]
        b_refs = [refs[2 + 2 * i] for i in range(num_layers)]
        o_refs = refs[1 + 2 * num_layers:]

        x = x_ref[...]  # bf16 activation carried between layers
        for i in range(num_layers):
            xf = x.astype(jnp.float32)
            # torch.nn.functional.normalize(x, p=2, dim=1, eps=1e-12):
            # x / max(||x||, 1e-12)  ==  x * rsqrt(max(sum(x^2), 1e-24)).
            sq = jnp.sum(xf * xf, axis=1, keepdims=True)
            inv = lax.rsqrt(jnp.maximum(sq, 1e-24))          # EUP slot
            xn = (xf * inv).astype(jnp.bfloat16)             # MXU operand dtype
            y = jnp.dot(xn, w_refs[i][...],                  # bf16 x bf16 -> f32 acc
                        preferred_element_type=jnp.float32)
            y = jnp.maximum(y + b_refs[i][...], 0.0)
            o_refs[i][...] = y.astype(o_refs[i].dtype)
            x = y.astype(jnp.bfloat16)                       # bf16 carry between layers

    return kernel


def prepare_pff_params(params):
    """One-time (hoisted) parameter padding + bf16 cast.

    params: list of (w, b) with w of shape (Din, Dout) (transposed relative to
    torch.nn.Linear) and b of shape (Dout,) or (1, Dout).
    Returns (padded_params, dims, dims_pad); weights bf16, biases f32, both
    zero-padded to x128 feature dims (exact: padded cols contribute 0).
    """
    dims = [params[0][0].shape[0]] + [w.shape[1] for (w, _) in params]
    dims_pad = [_round_up(d, 128) for d in dims]
    padded = []
    for i, (w, b) in enumerate(params):
        din, dout = dims[i], dims[i + 1]
        dinp, doutp = dims_pad[i], dims_pad[i + 1]
        w_p = jnp.zeros((dinp, doutp), jnp.bfloat16).at[:din, :dout].set(
            jnp.asarray(w).astype(jnp.bfloat16))
        b_p = jnp.zeros((1, doutp), jnp.float32).at[:, :dout].set(
            jnp.reshape(jnp.asarray(b), (1, dout)).astype(jnp.float32))
        padded.append((w_p, b_p))
    return padded, dims, dims_pad


def _param_bytes(group):
    return sum(w.size * w.dtype.itemsize + b.size * b.dtype.itemsize
               for (w, b) in group)


def _split_groups(padded_params, budget_bytes):
    """Split consecutive layers into groups whose resident params fit."""
    groups, cur, cur_bytes = [], [], 0
    for (w, b) in padded_params:
        pb = w.size * w.dtype.itemsize + b.size * b.dtype.itemsize
        if cur and cur_bytes + pb > budget_bytes:
            groups.append(cur)
            cur, cur_bytes = [], 0
        cur.append((w, b))
        cur_bytes += pb
    if cur:
        groups.append(cur)
    return groups


def _group_forward(x_pad, group_params, group_dims_pad, bb, out_dtype, vmem_cap):
    """One fused pallas_call over a group of consecutive layers."""
    num_layers = len(group_params)
    B_pad = x_pad.shape[0]
    grid = (B_pad // bb,)

    out_itemsize = np.dtype(out_dtype).itemsize
    est = (2 * _param_bytes(group_params)                       # params (worst case 2x)
           + 2 * bb * group_dims_pad[0] * 2                     # double-buffered bf16 input tile
           + 2 * bb * sum(group_dims_pad[1:]) * out_itemsize    # double-buffered output tiles
           + 3 * bb * max(group_dims_pad) * 4 + 2 * _MIB)       # f32 working set + slack
    vmem_limit = int(min(max(est, 32 * _MIB), vmem_cap))

    def build(single_buffer_params):
        pkw = dict(pipeline_mode=pl.Buffered(1)) if single_buffer_params else {}
        in_specs = [pl.BlockSpec((bb, group_dims_pad[0]), lambda i: (i, 0))]
        inputs = [x_pad]
        for (w_p, b_p) in group_params:
            # Constant index_map -> weights resident; single-buffer to avoid 2x VMEM.
            in_specs.append(pl.BlockSpec(w_p.shape, lambda i: (0, 0), **pkw))
            in_specs.append(pl.BlockSpec(b_p.shape, lambda i: (0, 0), **pkw))
            inputs.extend([w_p, b_p])
        out_shapes = tuple(
            jax.ShapeDtypeStruct((B_pad, group_dims_pad[li + 1]), out_dtype)
            for li in range(num_layers))
        out_specs = [
            pl.BlockSpec((bb, group_dims_pad[li + 1]), lambda i: (i, 0))
            for li in range(num_layers)
        ]
        call = pl.pallas_call(
            _make_pff_fused_kernel(num_layers),
            out_shape=out_shapes,
            grid_spec=pltpu.PrefetchScalarGridSpec(
                num_scalar_prefetch=0,
                grid=grid,
                in_specs=in_specs,
                out_specs=out_specs,
            ),
            compiler_params=pltpu.CompilerParams(
                dimension_semantics=("parallel",),
                vmem_limit_bytes=vmem_limit,
            ),
        )
        return call, inputs

    try:
        call, inputs = build(single_buffer_params=True)
        outs = jax.block_until_ready(call(*inputs))
    except Exception:
        # pl.Buffered(1) rejected by this jax version -> plain double-buffering.
        call, inputs = build(single_buffer_params=False)
        outs = call(*inputs)
    return list(outs)


def pff_forward(x, prepared, *, block_b=None, out_dtype=jnp.bfloat16):
    """PFF.forward: fused pallas_call(s) over the whole layer stack.

    `prepared` is the result of prepare_pff_params(params) (hoisted, one-time).
    Returns the list of hidden activations z_i with their true (unpadded)
    shapes, in `out_dtype`.
    """
    padded_params, dims, dims_pad = prepared
    num_layers = len(padded_params)
    B = x.shape[0]
    assert x.shape[1] == dims[0]

    if block_b is None:
        block_b = _default_block_b()
    vmem_cap = int(0.8 * _vmem_capacity_bytes())  # headroom for compiler scratch/sems
    out_itemsize = np.dtype(out_dtype).itemsize

    # Batch tile: multiple of 8 sublanes.  If the whole batch would fit in one
    # tile, split into >=2 tiles so both v7x TensorCores get work ("parallel"
    # grid axis); on single-TC generations this just adds one cheap step.
    B8 = _round_up(B, 8)
    if B8 <= block_b:
        bb = B8 if B8 < 16 else _round_up((B8 + 1) // 2, 8)
    else:
        bb = block_b

    # Resident-parameter budget; split the stack into chained groups if the
    # (bf16) parameters alone would blow v7x's per-core VMEM.
    param_budget = min(40 * _MIB, int(0.5 * vmem_cap))
    groups = _split_groups(padded_params, param_budget)
    max_group_pbytes = max(_param_bytes(g) for g in groups)

    # Shrink the batch tile until double-buffered tiles + resident params fit.
    def tile_bytes(bb_):
        return (2 * bb_ * dims_pad[0] * 2
                + 2 * bb_ * sum(dims_pad[1:]) * out_itemsize
                + 3 * bb_ * max(dims_pad) * 4)

    while bb > 8 and tile_bytes(bb) + 2 * max_group_pbytes > vmem_cap:
        bb = max(8, _round_up(bb // 2, 8))

    B_pad = _round_up(B, bb)

    # Pad input to lane-dense feature dim / batch tile; ship as bf16 (the MXU
    # operand dtype) to halve the input DMA.
    x_pad = jnp.zeros((B_pad, dims_pad[0]), jnp.bfloat16).at[:B, :dims[0]].set(
        x.astype(jnp.bfloat16))

    outs = []
    li = 0
    for g in groups:
        g_dims_pad = dims_pad[li:li + len(g) + 1]
        g_outs = _group_forward(x_pad, g, g_dims_pad, bb, out_dtype, vmem_cap)
        outs.extend(g_outs)
        li += len(g)
        if li < num_layers:
            x_pad = g_outs[-1].astype(jnp.bfloat16)  # chain padded activation

    # Strip padding back to the true shapes.  (Padded batch rows of each
    # output contain relu(bias); they are dropped here and never consumed.)
    return [outs[i][:B, :dims[i + 1]] for i in range(num_layers)]


def init_pff_params(key, sizes):
    """Deterministic init matching torch.nn.Linear default (U(+-1/sqrt(fan_in))).
    Only the per-layer representation weights are needed for forward();
    classifier / generator are not used in the forward pass."""
    params = []
    for i in range(1, len(sizes) - 1):
        din, dout = sizes[i - 1], sizes[i]
        key, kw, kb = jax.random.split(key, 3)
        bound = 1.0 / float(np.sqrt(din))
        w = jax.random.uniform(kw, (din, dout), jnp.float32, -bound, bound)
        b = jax.random.uniform(kb, (1, dout), jnp.float32, -bound, bound)
        params.append((w, b))
    return params


def pff_forward_ref(x, params):
    """Pure-JAX f32 reference for correctness checking."""
    z = []
    for (w, b) in params:
        n = jnp.maximum(jnp.sqrt(jnp.sum(x * x, axis=1, keepdims=True)), 1e-12)
        x = jnp.maximum(jnp.dot(x / n, w) + b, 0.0)
        z.append(x)
    return z


if __name__ == "__main__":
    # Small PFF: sizes = [input, hidden1, hidden2, num_classes] -> 2 layers.
    sizes = [32, 64, 48, 10]
    batch = 8

    key = jax.random.PRNGKey(0)
    key, kx = jax.random.split(key)
    x = jax.random.uniform(kx, (batch, sizes[0]), jnp.float32)  # pixel-like [0,1]
    params = init_pff_params(jax.random.PRNGKey(0), sizes)

    prepared = prepare_pff_params(params)  # one-time pad + bf16 cast (hoisted)
    z = pff_forward(x, prepared)
    z = [jax.block_until_ready(zi) for zi in z]

    # bf16 MXU operands / bf16 writeback -> relaxed tolerance vs f32 reference.
    z_ref = pff_forward_ref(x, params)
    for zi, zr in zip(z, z_ref):
        np.testing.assert_allclose(np.asarray(zi.astype(jnp.float32)),
                                   np.asarray(zr), rtol=2e-2, atol=2e-2)

    print("KERNEL_OK")
</pallas_src>

<mosaic_0001>
module attributes {stable_mosaic.version = 11 : i64} {
  func.func @kernel(%arg0: i32, %arg1: memref<8x128xbf16, #tpu.memory_space<vmem>>, %arg2: memref<128x128xbf16, #tpu.memory_space<vmem>>, %arg3: memref<1x128xf32, #tpu.memory_space<vmem>>, %arg4: memref<128x128xbf16, #tpu.memory_space<vmem>>, %arg5: memref<1x128xf32, #tpu.memory_space<vmem>>, %arg6: memref<8x128xbf16, #tpu.memory_space<vmem>>, %arg7: memref<8x128xbf16, #tpu.memory_space<vmem>>) attributes {dimension_semantics = [#tpu.dimension_semantics<parallel>], iteration_bounds = array<i64: 1>, scalar_prefetch = 0 : i64, scratch_operands = 0 : i64, tpu.core_type = #tpu.core_type<tc>, window_params = [{transform_indices = @transform_0, window_bounds = array<i64: 8, 128>}, {pipeline_mode = #tpu.pipeline_mode<synchronous>, transform_indices = @transform_1, window_bounds = array<i64: 128, 128>}, {pipeline_mode = #tpu.pipeline_mode<synchronous>, transform_indices = @transform_2, window_bounds = array<i64: 1, 128>}, {pipeline_mode = #tpu.pipeline_mode<synchronous>, transform_indices = @transform_3, window_bounds = array<i64: 128, 128>}, {pipeline_mode = #tpu.pipeline_mode<synchronous>, transform_indices = @transform_4, window_bounds = array<i64: 1, 128>}, {transform_indices = @transform_5, window_bounds = array<i64: 8, 128>}, {transform_indices = @transform_6, window_bounds = array<i64: 8, 128>}]} {
    %c0 = arith.constant 0 : index
    %c0_0 = arith.constant 0 : index
    %0 = vector.load %arg1[%c0, %c0_0] : memref<8x128xbf16, #tpu.memory_space<vmem>>, vector<8x128xbf16>
    %1 = arith.extf %0 : vector<8x128xbf16> to vector<8x128xf32>
    %2 = arith.mulf %1, %1 : vector<8x128xf32>
    %cst = arith.constant dense<0.000000e+00> : vector<8xf32>
    %3 = vector.multi_reduction <add>, %2, %cst [1] : vector<8x128xf32> to vector<8xf32>
    %4 = vector.shape_cast %3 : vector<8xf32> to vector<8x1xf32>
    %cst_1 = arith.constant 1.000000e-24 : f32
    %5 = vector.broadcast %cst_1 : f32 to vector<8x1xf32>
    %6 = arith.maximumf %4, %5 : vector<8x1xf32>
    %7 = math.rsqrt %6 : vector<8x1xf32>
    %8 = vector.broadcast %7 : vector<8x1xf32> to vector<8x128xf32>
    %9 = arith.mulf %1, %8 : vector<8x128xf32>
    %10 = arith.truncf %9 : vector<8x128xf32> to vector<8x128xbf16>
    %c0_2 = arith.constant 0 : index
    %c0_3 = arith.constant 0 : index
    %11 = vector.load %arg2[%c0_2, %c0_3] : memref<128x128xbf16, #tpu.memory_space<vmem>>, vector<128x128xbf16>
    %cst_4 = arith.constant dense<0.000000e+00> : vector<8x128xf32>
    %12 = tpu.matmul %10, %11, %cst_4 {dimension_numbers = #tpu.dot_dimension_numbers<[1], [0], [0], [1], [0, 0, 1, 1], [], []>} : vector<8x128xbf16>, vector<128x128xbf16>, vector<8x128xf32> -> vector<8x128xf32>
    %c0_5 = arith.constant 0 : index
    %c0_6 = arith.constant 0 : index
    %13 = vector.load %arg3[%c0_5, %c0_6] : memref<1x128xf32, #tpu.memory_space<vmem>>, vector<1x128xf32>
    %14 = vector.broadcast %13 : vector<1x128xf32> to vector<8x128xf32>
    %15 = arith.addf %12, %14 : vector<8x128xf32>
    %cst_7 = arith.constant 0.000000e+00 : f32
    %16 = vector.broadcast %cst_7 : f32 to vector<8x128xf32>
    %17 = arith.maximumf %15, %16 : vector<8x128xf32>
    %18 = arith.truncf %17 : vector<8x128xf32> to vector<8x128xbf16>
    %c0_8 = arith.constant 0 : index
    %c0_9 = arith.constant 0 : index
    %19 = vector.load %arg6[%c0_8, %c0_9] : memref<8x128xbf16, #tpu.memory_space<vmem>>, vector<8x128xbf16>
    tpu.vector_store %arg6[%c0_8, %c0_9], %18 {strides = array<i32>} : memref<8x128xbf16, #tpu.memory_space<vmem>>, vector<8x128xbf16>,
    %20 = arith.truncf %17 : vector<8x128xf32> to vector<8x128xbf16>
    %21 = arith.extf %20 : vector<8x128xbf16> to vector<8x128xf32>
    %22 = arith.mulf %21, %21 : vector<8x128xf32>
    %cst_10 = arith.constant dense<0.000000e+00> : vector<8xf32>
    %23 = vector.multi_reduction <add>, %22, %cst_10 [1] : vector<8x128xf32> to vector<8xf32>
    %24 = vector.shape_cast %23 : vector<8xf32> to vector<8x1xf32>
    %cst_11 = arith.constant 1.000000e-24 : f32
    %25 = vector.broadcast %cst_11 : f32 to vector<8x1xf32>
    %26 = arith.maximumf %24, %25 : vector<8x1xf32>
    %27 = math.rsqrt %26 : vector<8x1xf32>
    %28 = vector.broadcast %27 : vector<8x1xf32> to vector<8x128xf32>
    %29 = arith.mulf %21, %28 : vector<8x128xf32>
    %30 = arith.truncf %29 : vector<8x128xf32> to vector<8x128xbf16>
    %c0_12 = arith.constant 0 : index
    %c0_13 = arith.constant 0 : index
    %31 = vector.load %arg4[%c0_12, %c0_13] : memref<128x128xbf16, #tpu.memory_space<vmem>>, vector<128x128xbf16>
    %cst_14 = arith.constant dense<0.000000e+00> : vector<8x128xf32>
    %32 = tpu.matmul %30, %31, %cst_14 {dimension_numbers = #tpu.dot_dimension_numbers<[1], [0], [0], [1], [0, 0, 1, 1], [], []>} : vector<8x128xbf16>, vector<128x128xbf16>, vector<8x128xf32> -> vector<8x128xf32>
    %c0_15 = arith.constant 0 : index
    %c0_16 = arith.constant 0 : index
    %33 = vector.load %arg5[%c0_15, %c0_16] : memref<1x128xf32, #tpu.memory_space<vmem>>, vector<1x128xf32>
    %34 = vector.broadcast %33 : vector<1x128xf32> to vector<8x128xf32>
    %35 = arith.addf %32, %34 : vector<8x128xf32>
    %cst_17 = arith.constant 0.000000e+00 : f32
    %36 = vector.broadcast %cst_17 : f32 to vector<8x128xf32>
    %37 = arith.maximumf %35, %36 : vector<8x128xf32>
    %38 = arith.truncf %37 : vector<8x128xf32> to vector<8x128xbf16>
    %c0_18 = arith.constant 0 : index
    %c0_19 = arith.constant 0 : index
    %39 = vector.load %arg7[%c0_18, %c0_19] : memref<8x128xbf16, #tpu.memory_space<vmem>>, vector<8x128xbf16>
    tpu.vector_store %arg7[%c0_18, %c0_19], %38 {strides = array<i32>} : memref<8x128xbf16, #tpu.memory_space<vmem>>, vector<8x128xbf16>,
    return
  }
  func.func @transform_0(%arg0: i32) -> (i32, i32) {
    %c0_i32 = arith.constant 0 : i32
    %c0_i32_0 = arith.constant 0 : i32
    return %arg0, %c0_i32 : i32, i32
  }
  func.func @transform_1(%arg0: i32) -> (i32, i32) {
    %c0_i32 = arith.constant 0 : i32
    %c0_i32_0 = arith.constant 0 : i32
    %c0_i32_1 = arith.constant 0 : i32
    return %c0_i32, %c0_i32_0 : i32, i32
  }
  func.func @transform_2(%arg0: i32) -> (i32, i32) {
    %c0_i32 = arith.constant 0 : i32
    %c0_i32_0 = arith.constant 0 : i32
    %c0_i32_1 = arith.constant 0 : i32
    return %c0_i32, %c0_i32_0 : i32, i32
  }
  func.func @transform_3(%arg0: i32) -> (i32, i32) {
    %c0_i32 = arith.constant 0 : i32
    %c0_i32_0 = arith.constant 0 : i32
    %c0_i32_1 = arith.constant 0 : i32
    return %c0_i32, %c0_i32_0 : i32, i32
  }
  func.func @transform_4(%arg0: i32) -> (i32, i32) {
    %c0_i32 = arith.constant 0 : i32
    %c0_i32_0 = arith.constant 0 : i32
    %c0_i32_1 = arith.constant 0 : i32
    return %c0_i32, %c0_i32_0 : i32, i32
  }
  func.func @transform_5(%arg0: i32) -> (i32, i32) {
    %c0_i32 = arith.constant 0 : i32
    %c0_i32_0 = arith.constant 0 : i32
    return %arg0, %c0_i32 : i32, i32
  }
  func.func @transform_6(%arg0: i32) -> (i32, i32) {
    %c0_i32 = arith.constant 0 : i32
    %c0_i32_0 = arith.constant 0 : i32
    return %arg0, %c0_i32 : i32, i32
  }
}

module attributes {stable_mosaic.version = 11 : i64} {
  func.func @kernel(%arg0: i32, %arg1: memref<8x128xbf16, #tpu.memory_space<vmem>>, %arg2: memref<128x128xbf16, #tpu.memory_space<vmem>>, %arg3: memref<1x128xf32, #tpu.memory_space<vmem>>, %arg4: memref<128x128xbf16, #tpu.memory_space<vmem>>, %arg5: memref<1x128xf32, #tpu.memory_space<vmem>>, %arg6: memref<8x128xbf16, #tpu.memory_space<vmem>>, %arg7: memref<8x128xbf16, #tpu.memory_space<vmem>>) attributes {dimension_semantics = [#tpu.dimension_semantics<parallel>], iteration_bounds = array<i64: 1>, scalar_prefetch = 0 : i64, scratch_operands = 0 : i64, tpu.core_type = #tpu.core_type<tc>, window_params = [{transform_indices = @transform_0, window_bounds = array<i64: 8, 128>}, {pipeline_mode = #tpu.pipeline_mode<synchronous>, transform_indices = @transform_1, window_bounds = array<i64: 128, 128>}, {pipeline_mode = #tpu.pipeline_mode<synchronous>, transform_indices = @transform_2, window_bounds = array<i64: 1, 128>}, {pipeline_mode = #tpu.pipeline_mode<synchronous>, transform_indices = @transform_3, window_bounds = array<i64: 128, 128>}, {pipeline_mode = #tpu.pipeline_mode<synchronous>, transform_indices = @transform_4, window_bounds = array<i64: 1, 128>}, {transform_indices = @transform_5, window_bounds = array<i64: 8, 128>}, {transform_indices = @transform_6, window_bounds = array<i64: 8, 128>}]} {
    %c0 = arith.constant 0 : index
    %c0_0 = arith.constant 0 : index
    %0 = vector.load %arg1[%c0, %c0_0] : memref<8x128xbf16, #tpu.memory_space<vmem>>, vector<8x128xbf16>
    %1 = arith.extf %0 : vector<8x128xbf16> to vector<8x128xf32>
    %2 = arith.mulf %1, %1 : vector<8x128xf32>
    %cst = arith.constant dense<0.000000e+00> : vector<8xf32>
    %3 = vector.multi_reduction <add>, %2, %cst [1] : vector<8x128xf32> to vector<8xf32>
    %4 = vector.shape_cast %3 : vector<8xf32> to vector<8x1xf32>
    %cst_1 = arith.constant 1.000000e-24 : f32
    %5 = vector.broadcast %cst_1 : f32 to vector<8x1xf32>
    %6 = arith.maximumf %4, %5 : vector<8x1xf32>
    %7 = math.rsqrt %6 : vector<8x1xf32>
    %8 = vector.broadcast %7 : vector<8x1xf32> to vector<8x128xf32>
    %9 = arith.mulf %1, %8 : vector<8x128xf32>
    %10 = arith.truncf %9 : vector<8x128xf32> to vector<8x128xbf16>
    %c0_2 = arith.constant 0 : index
    %c0_3 = arith.constant 0 : index
    %11 = vector.load %arg2[%c0_2, %c0_3] : memref<128x128xbf16, #tpu.memory_space<vmem>>, vector<128x128xbf16>
    %cst_4 = arith.constant dense<0.000000e+00> : vector<8x128xf32>
    %12 = tpu.matmul %10, %11, %cst_4 {dimension_numbers = #tpu.dot_dimension_numbers<[1], [0], [0], [1], [0, 0, 1, 1], [], []>} : vector<8x128xbf16>, vector<128x128xbf16>, vector<8x128xf32> -> vector<8x128xf32>
    %c0_5 = arith.constant 0 : index
    %c0_6 = arith.constant 0 : index
    %13 = vector.load %arg3[%c0_5, %c0_6] : memref<1x128xf32, #tpu.memory_space<vmem>>, vector<1x128xf32>
    %14 = vector.broadcast %13 : vector<1x128xf32> to vector<8x128xf32>
    %15 = arith.addf %12, %14 : vector<8x128xf32>
    %cst_7 = arith.constant 0.000000e+00 : f32
    %16 = vector.broadcast %cst_7 : f32 to vector<8x128xf32>
    %17 = arith.maximumf %15, %16 : vector<8x128xf32>
    %18 = arith.truncf %17 : vector<8x128xf32> to vector<8x128xbf16>
    %c0_8 = arith.constant 0 : index
    %c0_9 = arith.constant 0 : index
    %19 = vector.load %arg6[%c0_8, %c0_9] : memref<8x128xbf16, #tpu.memory_space<vmem>>, vector<8x128xbf16>
    tpu.vector_store %arg6[%c0_8, %c0_9], %18 {strides = array<i32>} : memref<8x128xbf16, #tpu.memory_space<vmem>>, vector<8x128xbf16>,
    %20 = arith.truncf %17 : vector<8x128xf32> to vector<8x128xbf16>
    %21 = arith.extf %20 : vector<8x128xbf16> to vector<8x128xf32>
    %22 = arith.mulf %21, %21 : vector<8x128xf32>
    %cst_10 = arith.constant dense<0.000000e+00> : vector<8xf32>
    %23 = vector.multi_reduction <add>, %22, %cst_10 [1] : vector<8x128xf32> to vector<8xf32>
    %24 = vector.shape_cast %23 : vector<8xf32> to vector<8x1xf32>
    %cst_11 = arith.constant 1.000000e-24 : f32
    %25 = vector.broadcast %cst_11 : f32 to vector<8x1xf32>
    %26 = arith.maximumf %24, %25 : vector<8x1xf32>
    %27 = math.rsqrt %26 : vector<8x1xf32>
    %28 = vector.broadcast %27 : vector<8x1xf32> to vector<8x128xf32>
    %29 = arith.mulf %21, %28 : vector<8x128xf32>
    %30 = arith.truncf %29 : vector<8x128xf32> to vector<8x128xbf16>
    %c0_12 = arith.constant 0 : index
    %c0_13 = arith.constant 0 : index
    %31 = vector.load %arg4[%c0_12, %c0_13] : memref<128x128xbf16, #tpu.memory_space<vmem>>, vector<128x128xbf16>
    %cst_14 = arith.constant dense<0.000000e+00> : vector<8x128xf32>
    %32 = tpu.matmul %30, %31, %cst_14 {dimension_numbers = #tpu.dot_dimension_numbers<[1], [0], [0], [1], [0, 0, 1, 1], [], []>} : vector<8x128xbf16>, vector<128x128xbf16>, vector<8x128xf32> -> vector<8x128xf32>
    %c0_15 = arith.constant 0 : index
    %c0_16 = arith.constant 0 : index
    %33 = vector.load %arg5[%c0_15, %c0_16] : memref<1x128xf32, #tpu.memory_space<vmem>>, vector<1x128xf32>
    %34 = vector.broadcast %33 : vector<1x128xf32> to vector<8x128xf32>
    %35 = arith.addf %32, %34 : vector<8x128xf32>
    %cst_17 = arith.constant 0.000000e+00 : f32
    %36 = vector.broadcast %cst_17 : f32 to vector<8x128xf32>
    %37 = arith.maximumf %35, %36 : vector<8x128xf32>
    %38 = arith.truncf %37 : vector<8x128xf32> to vector<8x128xbf16>
    %c0_18 = arith.constant 0 : index
    %c0_19 = arith.constant 0 : index
    %39 = vector.load %arg7[%c0_18, %c0_19] : memref<8x128xbf16, #tpu.memory_space<vmem>>, vector<8x128xbf16>
    tpu.vector_store %arg7[%c0_18, %c0_19], %38 {strides = array<i32>} : memref<8x128xbf16, #tpu.memory_space<vmem>>, vector<8x128xbf16>,
    return
  }
  func.func @transform_0(%arg0: i32) -> (i32, i32) {
    %c0_i32 = arith.constant 0 : i32
    %c0_i32_0 = arith.constant 0 : i32
    return %arg0, %c0_i32 : i32, i32
  }
  func.func @transform_1(%arg0: i32) -> (i32, i32) {
    %c0_i32 = arith.constant 0 : i32
    %c0_i32_0 = arith.constant 0 : i32
    %c0_i32_1 = arith.constant 0 : i32
    return %c0_i32, %c0_i32_0 : i32, i32
  }
  func.func @transform_2(%arg0: i32) -> (i32, i32) {
    %c0_i32 = arith.constant 0 : i32
    %c0_i32_0 = arith.constant 0 : i32
    %c0_i32_1 = arith.constant 0 : i32
    return %c0_i32, %c0_i32_0 : i32, i32
  }
  func.func @transform_3(%arg0: i32) -> (i32, i32) {
    %c0_i32 = arith.constant 0 : i32
    %c0_i32_0 = arith.constant 0 : i32
    %c0_i32_1 = arith.constant 0 : i32
    return %c0_i32, %c0_i32_0 : i32, i32
  }
  func.func @transform_4(%arg0: i32) -> (i32, i32) {
    %c0_i32 = arith.constant 0 : i32
    %c0_i32_0 = arith.constant 0 : i32
    %c0_i32_1 = arith.constant 0 : i32
    return %c0_i32, %c0_i32_0 : i32, i32
  }
  func.func @transform_5(%arg0: i32) -> (i32, i32) {
    %c0_i32 = arith.constant 0 : i32
    %c0_i32_0 = arith.constant 0 : i32
    return %arg0, %c0_i32 : i32, i32
  }
  func.func @transform_6(%arg0: i32) -> (i32, i32) {
    %c0_i32 = arith.constant 0 : i32
    %c0_i32_0 = arith.constant 0 : i32
    return %arg0, %c0_i32 : i32, i32
  }
}

</mosaic_0001>

<bundles_post_ra>
// kernel: tpu_custom_call.1
= control target key start
LH: loop header
LB: loop body
LE: loop exit
PB: predicated region body
PF: predicated region fallthrough
CT: control target
= control target key end

     0   :  { %12 = vsyncpa [#allocation3], 0  ;;  %s696_s0 = inlined_call_operand.hbm [shape: bf16[8,128], index: 0, kind: input, shape index: {}]   ;;  %s697_s1 = inlined_call_operand.hbm [shape: bf16[128,128], index: 1, kind: input, shape index: {}]   ;;  %s698_s2 = inlined_call_operand.vmem [shape: f32[1,128], index: 2, kind: input, shape index: {}]   ;;  %s699_s3 = inlined_call_operand.hbm [shape: bf16[128,128], index: 3, kind: input, shape index: {}]   ;;  %s700_s4 = inlined_call_operand.vmem [shape: f32[1,128], index: 4, kind: input, shape index: {}]   ;;  %s701_s5 = inlined_call_operand.hbm [shape: bf16[8,128], index: 5, kind: output, shape index: {0}]   ;;  %s702_s6 = inlined_call_operand.hbm [shape: bf16[8,128], index: 6, kind: output, shape index: {1}]  }
   0x1   :  { %13 = vsyncpa [#allocation6], 0 }
   0x2   :  { %14 = vsyncpa [#allocation4], 0 }
   0x3   :  { %15 = vsyncpa [#allocation10], 0  ;;  %s562_s21 = smov [#allocation5]   ;;  %s444_s25 = scalar_lea.hbm %s697_s1, 1024 }
   0x4   :  { %s31_s22 = sshll.u32 %s562_s21, 4  ;;  %p445_p0 = scmp.ne.s32.totalorder %s697_s1, %s444_s25  ;;  %s32_s22 = int_to_ptr.vmem [resolvable:$true] %s31_s22 }
   0x5   :  { %p448_p1 = scmp.lt.u32.totalorder %s444_s25, %s697_s1 }
   0x7   :  { %p450_p2 = pnand %p448_p1, %p445_p0 }
   0x9   :  { %453 = shalt.err (!%p450_p2)
}
   0xa   :  { %s454_s30 = scalar_lea.vmem %s32_s22, 1024  ;;  %p459_p4 = scmp.lt.s32.totalorder %s32_s22, %s32_s22 }
   0xb   :  { %p455_p3 = scmp.ne.s32.totalorder %s32_s22, %s454_s30  ;;  %p460_p5 = scmp.lt.s32.totalorder %s454_s30, %s454_s30 }
   0xd   :  { %p461_p6 = por %p460_p5, %p459_p4 }
   0xf   :  { %p462_p7 = pnand %p461_p6, %p455_p3 }
  0x11   :  { %465 = shalt.err (!%p462_p7)
}
  0x12   :  { %s563_s7 = smov 64   ;;  %s564_s8 = smov 4  }
  0x13   :  { %37 = dma.hbm_to_vmem [thread:$0]  %s697_s1, 1024, %s32_s22, [#allocation6], %s563_s7, %s563_s7, %s564_s8  }
  0x14   :  { %s565_s11 = smov [#allocation2]   ;;  %s566_s13 = smov [#allocation7]  }
  0x15   :  { %s22_s12 = sshll.u32 %s565_s11, 4  ;;  %s45_s14 = sshll.u32 %s566_s13, 4  ;;  %s23_s12 = int_to_ptr.vmem [resolvable:$true] %s22_s12  ;;  %s46_s14 = int_to_ptr.vmem [resolvable:$true] %s45_s14 }
  0x16   :  { %s466_s17 = scalar_lea.hbm %s696_s0, 64 }
  0x17   :  { %p467_p8 = scmp.ne.s32.totalorder %s696_s0, %s466_s17  ;;  %p470_p9 = scmp.lt.u32.totalorder %s466_s17, %s696_s0 }
  0x19   :  { %p472_p10 = pnand %p470_p9, %p467_p8 }
  0x1b   :  { %475 = shalt.err (!%p472_p10)
}
  0x1c   :  { %s476_s1 = scalar_lea.vmem %s23_s12, 64  ;;  %p481_p12 = scmp.lt.s32.totalorder %s23_s12, %s23_s12 }
  0x1d   :  { %p477_p11 = scmp.ne.s32.totalorder %s23_s12, %s476_s1  ;;  %p482_p13 = scmp.lt.s32.totalorder %s476_s1, %s476_s1 }
  0x1f   :  { %p483_p0 = por %p482_p13, %p481_p12 }
  0x21   :  { %p484_p1 = pnand %p483_p0, %p477_p11 }
  0x23   :  { %487 = shalt.err (!%p484_p1)
}
  0x24   :  { %25 = dma.hbm_to_vmem [thread:$0]  %s696_s0, 64, %s23_s12, [#allocation3]  }
  0x25   :  { %s488_s26 = scalar_lea.hbm %s699_s3, 1024 }
  0x26   :  { %p489_p2 = scmp.ne.s32.totalorder %s699_s3, %s488_s26  ;;  %p492_p3 = scmp.lt.u32.totalorder %s488_s26, %s699_s3 }
  0x28   :  { %p494_p4 = pnand %p492_p3, %p489_p2 }
  0x2a   :  { %497 = shalt.err (!%p494_p4)
}
  0x2b   :  { %s498_s9 = scalar_lea.vmem %s46_s14, 1024  ;;  %p503_p6 = scmp.lt.s32.totalorder %s46_s14, %s46_s14 }
  0x2c   :  { %p499_p5 = scmp.ne.s32.totalorder %s46_s14, %s498_s9  ;;  %p504_p7 = scmp.lt.s32.totalorder %s498_s9, %s498_s9 }
  0x2e   :  { %p505_p8 = por %p504_p7, %p503_p6 }
  0x30   :  { %p506_p9 = pnand %p505_p8, %p499_p5 }
  0x32   :  { %509 = shalt.err (!%p506_p9)
}
  0x33   :  { %51 = dma.hbm_to_vmem [thread:$0]  %s699_s3, 1024, %s46_s14, [#allocation6], %s563_s7, %s563_s7, %s564_s8  }
  0x34   :  { %554 = dma.done.wait [#allocation3], 64  }
  0x35   :  { %555 = vsyncadd [#allocation3], 4294967232 }
  0x36   :  { %556 = dma.done.wait [#allocation6], 2048  }
  0x37   :  { %557 = vsyncadd [#allocation6], 4294965248  ;;  %v567_v0 = vmov 0.0   ;;  %v64_v1 = vld [vmem:[#allocation2] sm:$0xf]  ;;  %v424_v3 = vld [vmem:[#allocation5] sm:$0xff]  }
  0x38   :  { %375 = vmatprep.subr.bf16.mxu0 %v567_v0  ;;  %395 = vmatprep.subr.bf16.mxu1 %v567_v0  ;;  %v65_v2 = vunpack.c.l.bf16 %v64_v1  ;;  %v425_v5 = vld [vmem:[#allocation5 + $0x8] sm:$0xff]   ;;  %v426_v6 = vld [vmem:[#allocation5 + $0x10] sm:$0xff]   ;;  %v427_v7 = vld [vmem:[#allocation5 + $0x18] sm:$0xff]   ;;  %vm568_vm0 = vmmov 0  }
  0x39   :  { %376 = vmatpush3.bf16.msra.mxu0 %v424_v3  ;;  %v428_v8 = vld [vmem:[#allocation5 + $0x20] sm:$0xff]   ;;  %v429_v9 = vld [vmem:[#allocation5 + $0x28] sm:$0xff]   ;;  %391 = vmatprep.mubr.msk.bf16.mxu0 %vm568_vm0, %v567_v0  ;;  %v430_v10 = vld [vmem:[#allocation5 + $0x30] sm:$0xff]  }
  0x3a   :  { %v66_v4 = vmul.f32 %v65_v2, %v65_v2  ;;  %377 = vmatprep.subr.bf16.mxu0 %v567_v0  ;;  %411 = vmatprep.mubr.msk.bf16.mxu1 %vm568_vm0, %v567_v0  ;;  %v431_v11 = vld [vmem:[#allocation5 + $0x38] sm:$0xff]   ;;  %v432_v17 = vld [vmem:[#allocation7] sm:$0xff]   ;;  %v433_v18 = vld [vmem:[#allocation7 + $0x8] sm:$0xff]  }
  0x3b   :  { %396 = vmatpush3.bf16.msra.mxu1 %v432_v17  ;;  %v434_v19 = vld [vmem:[#allocation7 + $0x10] sm:$0xff]   ;;  %v435_v20 = vld [vmem:[#allocation7 + $0x18] sm:$0xff]   ;;  %v436_v31 = vld [vmem:[#allocation7 + $0x20] sm:$0xff]  }
  0x3c   :  { %67 = vadd.xlane.f32.xlu0 %v66_v4  ;;  %397 = vmatprep.subr.bf16.mxu1 %v567_v0  ;;  %v339_v21 = vld [vmem:[%s698_s2] ss:$0 sm:$0xff]  ;;  %v437_v32 = vld [vmem:[#allocation7 + $0x28] sm:$0xff]   ;;  %v438_v33 = vld [vmem:[#allocation7 + $0x30] sm:$0xff]   ;;  %s569_s2 = smov [#allocation8]  }
  0x3d   :  { %378 = vmatpush3.bf16.msra.mxu0 %v425_v5  ;;  %v439_v34 = vld [vmem:[#allocation7 + $0x38] sm:$0xff]   ;;  %s315_s8 = sshll.u32 %s569_s2, 4  ;;  %s316_s8 = int_to_ptr.vmem [resolvable:$true] %s315_s8 }
  0x3e   :  { %379 = vmatprep.subr.bf16.mxu0 %v567_v0  ;;  %s510_s11 = scalar_lea.vmem %s316_s8, 64  ;;  %p515_p11 = scmp.lt.s32.totalorder %s316_s8, %s316_s8 }
  0x3f   :  { %398 = vmatpush3.bf16.msra.mxu1 %v433_v18  ;;  %p511_p10 = scmp.ne.s32.totalorder %s316_s8, %s510_s11  ;;  %p516_p12 = scmp.lt.s32.totalorder %s510_s11, %s510_s11 }
  0x40   :  { %399 = vmatprep.subr.bf16.mxu1 %v567_v0 }
  0x41   :  { %380 = vmatpush3.bf16.msra.mxu0 %v426_v6  ;;  %p517_p13 = por %p516_p12, %p515_p11 }
  0x42   :  { %381 = vmatprep.subr.bf16.mxu0 %v567_v0 }
  0x43   :  { %400 = vmatpush3.bf16.msra.mxu1 %v434_v19  ;;  %p518_p0 = pnand %p517_p13, %p511_p10 }
  0x44   :  { %401 = vmatprep.subr.bf16.mxu1 %v567_v0 }
  0x45   :  { %382 = vmatpush3.bf16.msra.mxu0 %v427_v7 }
  0x46   :  { %383 = vmatprep.subr.bf16.mxu0 %v567_v0 }
  0x47   :  { %402 = vmatpush3.bf16.msra.mxu1 %v435_v20 }
  0x48   :  { %403 = vmatprep.subr.bf16.mxu1 %v567_v0 }
  0x49   :  { %384 = vmatpush3.bf16.msra.mxu0 %v428_v8 }
  0x4a   :  { %385 = vmatprep.subr.bf16.mxu0 %v567_v0 }
  0x4b   :  { %404 = vmatpush3.bf16.msra.mxu1 %v436_v31 }
  0x4c   :  { %405 = vmatprep.subr.bf16.mxu1 %v567_v0 }
  0x4d   :  { %386 = vmatpush3.bf16.msra.mxu0 %v429_v9 }
  0x4e   :  { %387 = vmatprep.subr.bf16.mxu0 %v567_v0 }
  0x4f   :  { %406 = vmatpush3.bf16.msra.mxu1 %v437_v32 }
  0x50   :  { %407 = vmatprep.subr.bf16.mxu1 %v567_v0 }
  0x51   :  { %388 = vmatpush3.bf16.msra.mxu0 %v430_v10 }
  0x52   :  { %389 = vmatprep.subr.bf16.mxu0 %v567_v0 }
  0x53   :  { %408 = vmatpush3.bf16.msra.mxu1 %v438_v33 }
  0x54   :  { %409 = vmatprep.subr.bf16.mxu1 %v567_v0 }
  0x55   :  { %390 = vmatpush3.bf16.msra.mxu0 %v431_v11 }
  0x57   :  { %410 = vmatpush3.bf16.msra.mxu1 %v439_v34 }
  0xc9   :  { %v68_v12 = vpop.xlane.xlu0 %67 }
  0xca   :  { %v69_v13 = vmax.f32 %v68_v12, 1e-24 }
  0xcc   :  { %440 = vrsqrt.f32 %v69_v13 }
  0xd6   :  { %v441_v14 = vpop.eup %440 }
  0xd7   :  { %v71_v15 = vmul.f32 %v441_v14, %v65_v2 }
  0xd9   :  { %v72_v16 = vpack.c.bf16 %v71_v15, %v71_v15 }
  0xdb   :  { %392 = vmatmul.mubr.bf16.vlgmr.msra.gmra.mrb[0].mxu0 %v72_v16 }
 0x1ae   :  { %v178_v22 = vpop.f32.mrb[0].mxu0 }
 0x1af   :  { %v179_v23 = vadd.f32 %v339_v21, %v178_v22  ;;  %v393_v24 = vpop.f32.mrb[1].mxu0 }
 0x1b0   :  { %v181_v25 = vpop.f32.mrb[2].mxu0 }
 0x1b1   :  { %v184_v26 = vmax.f32 %v179_v23, 0.0  ;;  %v394_v27 = vpop.f32.mrb[3].mxu0 }
 0x1b3   :  { %v185_v28 = vpack.c.bf16 %v184_v26, %v184_v26 }
 0x1b5   :  { %186 = vst [vmem:[#allocation8] sm:$0xf] %v185_v28  ;;  %v187_v29 = vunpack.c.l.bf16 %v185_v28 }
 0x1b7   :  { %v188_v30 = vmul.f32 %v187_v29, %v187_v29 }
 0x1b9   :  { %189 = vadd.xlane.f32.xlu0 %v188_v30 }
 0x246   :  { %v190_v35 = vpop.xlane.xlu0 %189 }
 0x247   :  { %v191_v36 = vmax.f32 %v190_v35, 1e-24 }
 0x249   :  { %442 = vrsqrt.f32 %v191_v36 }
 0x253   :  { %v443_v37 = vpop.eup %442 }
 0x254   :  { %v193_v38 = vmul.f32 %v443_v37, %v187_v29 }
 0x256   :  { %v194_v39 = vpack.c.bf16 %v193_v38, %v193_v38 }
 0x258   :  { %412 = vmatmul.mubr.bf16.vlgmr.msra.gmra.mrb[0].mxu1 %v194_v39 }
 0x259   :  { %521 = shalt.err (!%p518_p0)
}
 0x25a   :  { %s522_s14 = scalar_lea.hbm %s701_s5, 64 }
 0x25b   :  { %p523_p1 = scmp.ne.s32.totalorder %s701_s5, %s522_s14  ;;  %p526_p2 = scmp.lt.u32.totalorder %s522_s14, %s701_s5 }
 0x25d   :  { %p528_p3 = pnand %p526_p2, %p523_p1 }
 0x25f   :  { %531 = shalt.err (!%p528_p3)
}
 0x260   :  { %318 = dma.vmem_to_hbm [thread:$0]  %s316_s8, 64, %s701_s5, [#allocation4]   ;;  %v348_v40 = vld [vmem:[%s700_s4] ss:$0 sm:$0xff] }
 0x261   :  { %s570_s22 = smov [#allocation9]  }
 0x262   :  { %s325_s23 = sshll.u32 %s570_s22, 4  ;;  %s326_s23 = int_to_ptr.vmem [resolvable:$true] %s325_s23 }
 0x263   :  { %s532_s24 = scalar_lea.vmem %s326_s23, 64  ;;  %p537_p5 = scmp.lt.s32.totalorder %s326_s23, %s326_s23 }
 0x264   :  { %p533_p4 = scmp.ne.s32.totalorder %s326_s23, %s532_s24  ;;  %p538_p6 = scmp.lt.s32.totalorder %s532_s24, %s532_s24 }
 0x266   :  { %p539_p7 = por %p538_p6, %p537_p5 }
 0x268   :  { %p540_p8 = pnand %p539_p7, %p533_p4 }
 0x32b   :  { %v300_v41 = vpop.f32.mrb[0].mxu1 }
 0x32c   :  { %v301_v42 = vadd.f32 %v348_v40, %v300_v41  ;;  %v413_v43 = vpop.f32.mrb[1].mxu1 }
 0x32d   :  { %v303_v44 = vpop.f32.mrb[2].mxu1 }
 0x32e   :  { %v306_v45 = vmax.f32 %v301_v42, 0.0  ;;  %v414_v46 = vpop.f32.mrb[3].mxu1 }
 0x330   :  { %v307_v47 = vpack.c.bf16 %v306_v45, %v306_v45 }
 0x332   :  { %308 = vst [vmem:[#allocation9] sm:$0xf] %v307_v47 }
 0x333   :  { %543 = shalt.err (!%p540_p8)
}
 0x334   :  { %s544_s25 = scalar_lea.hbm %s702_s6, 64 }
 0x335   :  { %p545_p9 = scmp.ne.s32.totalorder %s702_s6, %s544_s25  ;;  %p548_p10 = scmp.lt.u32.totalorder %s544_s25, %s702_s6 }
 0x337   :  { %p550_p11 = pnand %p548_p10, %p545_p9 }
 0x339   :  { %553 = shalt.err (!%p550_p11)
}
 0x33a   :  { %328 = dma.vmem_to_hbm [thread:$0]  %s326_s23, 64, %s702_s6, [#allocation10]  }
 0x33b   :  { %558 = dma.done.wait [#allocation4], 64  }
 0x33c   :  { %559 = vsyncadd [#allocation4], 4294967232 }
 0x33d   :  { %560 = dma.done.wait [#allocation10], 64  }
 0x33e   :  { %561 = vsyncadd [#allocation10], 4294967232 }
 0x33f   :  { %335 = vsyncpa [#allocation3], 1 }
 0x340   :  { %336 = vsyncpa [#allocation6], 1 }
 0x341   :  { %337 = vsyncpa [#allocation4], 1 }
 0x342   :  { %338 = vsyncpa [#allocation10], 1 }

// kernel: tpu_custom_call.1
= control target key start
LH: loop header
LB: loop body
LE: loop exit
PB: predicated region body
PF: predicated region fallthrough
CT: control target
= control target key end

     0   :  { %12 = vsyncpa [#allocation3], 0  ;;  %s696_s0 = inlined_call_operand.hbm [shape: bf16[8,128], index: 0, kind: input, shape index: {}]   ;;  %s697_s1 = inlined_call_operand.hbm [shape: bf16[128,128], index: 1, kind: input, shape index: {}]   ;;  %s698_s2 = inlined_call_operand.vmem [shape: f32[1,128], index: 2, kind: input, shape index: {}]   ;;  %s699_s3 = inlined_call_operand.hbm [shape: bf16[128,128], index: 3, kind: input, shape index: {}]   ;;  %s700_s4 = inlined_call_operand.vmem [shape: f32[1,128], index: 4, kind: input, shape index: {}]   ;;  %s701_s5 = inlined_call_operand.hbm [shape: bf16[8,128], index: 5, kind: output, shape index: {0}]   ;;  %s702_s6 = inlined_call_operand.hbm [shape: bf16[8,128], index: 6, kind: output, shape index: {1}]  }
   0x1   :  { %13 = vsyncpa [#allocation6], 0 }
   0x2   :  { %14 = vsyncpa [#allocation4], 0 }
   0x3   :  { %15 = vsyncpa [#allocation10], 0  ;;  %s562_s21 = smov [#allocation5]   ;;  %s444_s25 = scalar_lea.hbm %s697_s1, 1024 }
   0x4   :  { %s31_s22 = sshll.u32 %s562_s21, 4  ;;  %p445_p0 = scmp.ne.s32.totalorder %s697_s1, %s444_s25  ;;  %s32_s22 = int_to_ptr.vmem [resolvable:$true] %s31_s22 }
   0x5   :  { %p448_p1 = scmp.lt.u32.totalorder %s444_s25, %s697_s1 }
   0x7   :  { %p450_p2 = pnand %p448_p1, %p445_p0 }
   0x9   :  { %453 = shalt.err (!%p450_p2)
}
   0xa   :  { %s454_s30 = scalar_lea.vmem %s32_s22, 1024  ;;  %p459_p4 = scmp.lt.s32.totalorder %s32_s22, %s32_s22 }
   0xb   :  { %p455_p3 = scmp.ne.s32.totalorder %s32_s22, %s454_s30  ;;  %p460_p5 = scmp.lt.s32.totalorder %s454_s30, %s454_s30 }
   0xd   :  { %p461_p6 = por %p460_p5, %p459_p4 }
   0xf   :  { %p462_p7 = pnand %p461_p6, %p455_p3 }
  0x11   :  { %465 = shalt.err (!%p462_p7)
}
  0x12   :  { %s563_s7 = smov 64   ;;  %s564_s8 = smov 4  }
  0x13   :  { %37 = dma.hbm_to_vmem [thread:$0]  %s697_s1, 1024, %s32_s22, [#allocation6], %s563_s7, %s563_s7, %s564_s8  }
  0x14   :  { %s565_s11 = smov [#allocation2]   ;;  %s566_s13 = smov [#allocation7]  }
  0x15   :  { %s22_s12 = sshll.u32 %s565_s11, 4  ;;  %s45_s14 = sshll.u32 %s566_s13, 4  ;;  %s23_s12 = int_to_ptr.vmem [resolvable:$true] %s22_s12  ;;  %s46_s14 = int_to_ptr.vmem [resolvable:$true] %s45_s14 }
  0x16   :  { %s466_s17 = scalar_lea.hbm %s696_s0, 64 }
  0x17   :  { %p467_p8 = scmp.ne.s32.totalorder %s696_s0, %s466_s17  ;;  %p470_p9 = scmp.lt.u32.totalorder %s466_s17, %s696_s0 }
  0x19   :  { %p472_p10 = pnand %p470_p9, %p467_p8 }
  0x1b   :  { %475 = shalt.err (!%p472_p10)
}
  0x1c   :  { %s476_s1 = scalar_lea.vmem %s23_s12, 64  ;;  %p481_p12 = scmp.lt.s32.totalorder %s23_s12, %s23_s12 }
  0x1d   :  { %p477_p11 = scmp.ne.s32.totalorder %s23_s12, %s476_s1  ;;  %p482_p13 = scmp.lt.s32.totalorder %s476_s1, %s476_s1 }
  0x1f   :  { %p483_p0 = por %p482_p13, %p481_p12 }
  0x21   :  { %p484_p1 = pnand %p483_p0, %p477_p11 }
  0x23   :  { %487 = shalt.err (!%p484_p1)
}
  0x24   :  { %25 = dma.hbm_to_vmem [thread:$0]  %s696_s0, 64, %s23_s12, [#allocation3]  }
  0x25   :  { %s488_s26 = scalar_lea.hbm %s699_s3, 1024 }
  0x26   :  { %p489_p2 = scmp.ne.s32.totalorder %s699_s3, %s488_s26  ;;  %p492_p3 = scmp.lt.u32.totalorder %s488_s26, %s699_s3 }
  0x28   :  { %p494_p4 = pnand %p492_p3, %p489_p2 }
  0x2a   :  { %497 = shalt.err (!%p494_p4)
}
  0x2b   :  { %s498_s9 = scalar_lea.vmem %s46_s14, 1024  ;;  %p503_p6 = scmp.lt.s32.totalorder %s46_s14, %s46_s14 }
  0x2c   :  { %p499_p5 = scmp.ne.s32.totalorder %s46_s14, %s498_s9  ;;  %p504_p7 = scmp.lt.s32.totalorder %s498_s9, %s498_s9 }
  0x2e   :  { %p505_p8 = por %p504_p7, %p503_p6 }
  0x30   :  { %p506_p9 = pnand %p505_p8, %p499_p5 }
  0x32   :  { %509 = shalt.err (!%p506_p9)
}
  0x33   :  { %51 = dma.hbm_to_vmem [thread:$0]  %s699_s3, 1024, %s46_s14, [#allocation6], %s563_s7, %s563_s7, %s564_s8  }
  0x34   :  { %554 = dma.done.wait [#allocation3], 64  }
  0x35   :  { %555 = vsyncadd [#allocation3], 4294967232 }
  0x36   :  { %556 = dma.done.wait [#allocation6], 2048  }
  0x37   :  { %557 = vsyncadd [#allocation6], 4294965248  ;;  %v567_v0 = vmov 0.0   ;;  %v64_v1 = vld [vmem:[#allocation2] sm:$0xf]  ;;  %v424_v3 = vld [vmem:[#allocation5] sm:$0xff]  }
  0x38   :  { %375 = vmatprep.subr.bf16.mxu0 %v567_v0  ;;  %395 = vmatprep.subr.bf16.mxu1 %v567_v0  ;;  %v65_v2 = vunpack.c.l.bf16 %v64_v1  ;;  %v425_v5 = vld [vmem:[#allocation5 + $0x8] sm:$0xff]   ;;  %v426_v6 = vld [vmem:[#allocation5 + $0x10] sm:$0xff]   ;;  %v427_v7 = vld [vmem:[#allocation5 + $0x18] sm:$0xff]   ;;  %vm568_vm0 = vmmov 0  }
  0x39   :  { %376 = vmatpush3.bf16.msra.mxu0 %v424_v3  ;;  %v428_v8 = vld [vmem:[#allocation5 + $0x20] sm:$0xff]   ;;  %v429_v9 = vld [vmem:[#allocation5 + $0x28] sm:$0xff]   ;;  %391 = vmatprep.mubr.msk.bf16.mxu0 %vm568_vm0, %v567_v0  ;;  %v430_v10 = vld [vmem:[#allocation5 + $0x30] sm:$0xff]  }
  0x3a   :  { %v66_v4 = vmul.f32 %v65_v2, %v65_v2  ;;  %377 = vmatprep.subr.bf16.mxu0 %v567_v0  ;;  %411 = vmatprep.mubr.msk.bf16.mxu1 %vm568_vm0, %v567_v0  ;;  %v431_v11 = vld [vmem:[#allocation5 + $0x38] sm:$0xff]   ;;  %v432_v17 = vld [vmem:[#allocation7] sm:$0xff]   ;;  %v433_v18 = vld [vmem:[#allocation7 + $0x8] sm:$0xff]  }
  0x3b   :  { %396 = vmatpush3.bf16.msra.mxu1 %v432_v17  ;;  %v434_v19 = vld [vmem:[#allocation7 + $0x10] sm:$0xff]   ;;  %v435_v20 = vld [vmem:[#allocation7 + $0x18] sm:$0xff]   ;;  %v436_v31 = vld [vmem:[#allocation7 + $0x20] sm:$0xff]  }
  0x3c   :  { %67 = vadd.xlane.f32.xlu0 %v66_v4  ;;  %397 = vmatprep.subr.bf16.mxu1 %v567_v0  ;;  %v339_v21 = vld [vmem:[%s698_s2] ss:$0 sm:$0xff]  ;;  %v437_v32 = vld [vmem:[#allocation7 + $0x28] sm:$0xff]   ;;  %v438_v33 = vld [vmem:[#allocation7 + $0x30] sm:$0xff]   ;;  %s569_s2 = smov [#allocation8]  }
  0x3d   :  { %378 = vmatpush3.bf16.msra.mxu0 %v425_v5  ;;  %v439_v34 = vld [vmem:[#allocation7 + $0x38] sm:$0xff]   ;;  %s315_s8 = sshll.u32 %s569_s2, 4  ;;  %s316_s8 = int_to_ptr.vmem [resolvable:$true] %s315_s8 }
  0x3e   :  { %379 = vmatprep.subr.bf16.mxu0 %v567_v0  ;;  %s510_s11 = scalar_lea.vmem %s316_s8, 64  ;;  %p515_p11 = scmp.lt.s32.totalorder %s316_s8, %s316_s8 }
  0x3f   :  { %398 = vmatpush3.bf16.msra.mxu1 %v433_v18  ;;  %p511_p10 = scmp.ne.s32.totalorder %s316_s8, %s510_s11  ;;  %p516_p12 = scmp.lt.s32.totalorder %s510_s11, %s510_s11 }
  0x40   :  { %399 = vmatprep.subr.bf16.mxu1 %v567_v0 }
  0x41   :  { %380 = vmatpush3.bf16.msra.mxu0 %v426_v6  ;;  %p517_p13 = por %p516_p12, %p515_p11 }
  0x42   :  { %381 = vmatprep.subr.bf16.mxu0 %v567_v0 }
  0x43   :  { %400 = vmatpush3.bf16.msra.mxu1 %v434_v19  ;;  %p518_p0 = pnand %p517_p13, %p511_p10 }
  0x44   :  { %401 = vmatprep.subr.bf16.mxu1 %v567_v0 }
  0x45   :  { %382 = vmatpush3.bf16.msra.mxu0 %v427_v7 }
  0x46   :  { %383 = vmatprep.subr.bf16.mxu0 %v567_v0 }
  0x47   :  { %402 = vmatpush3.bf16.msra.mxu1 %v435_v20 }
  0x48   :  { %403 = vmatprep.subr.bf16.mxu1 %v567_v0 }
  0x49   :  { %384 = vmatpush3.bf16.msra.mxu0 %v428_v8 }
  0x4a   :  { %385 = vmatprep.subr.bf16.mxu0 %v567_v0 }
  0x4b   :  { %404 = vmatpush3.bf16.msra.mxu1 %v436_v31 }
  0x4c   :  { %405 = vmatprep.subr.bf16.mxu1 %v567_v0 }
  0x4d   :  { %386 = vmatpush3.bf16.msra.mxu0 %v429_v9 }
  0x4e   :  { %387 = vmatprep.subr.bf16.mxu0 %v567_v0 }
  0x4f   :  { %406 = vmatpush3.bf16.msra.mxu1 %v437_v32 }
  0x50   :  { %407 = vmatprep.subr.bf16.mxu1 %v567_v0 }
  0x51   :  { %388 = vmatpush3.bf16.msra.mxu0 %v430_v10 }
  0x52   :  { %389 = vmatprep.subr.bf16.mxu0 %v567_v0 }
  0x53   :  { %408 = vmatpush3.bf16.msra.mxu1 %v438_v33 }
  0x54   :  { %409 = vmatprep.subr.bf16.mxu1 %v567_v0 }
  0x55   :  { %390 = vmatpush3.bf16.msra.mxu0 %v431_v11 }
  0x57   :  { %410 = vmatpush3.bf16.msra.mxu1 %v439_v34 }
  0xc9   :  { %v68_v12 = vpop.xlane.xlu0 %67 }
  0xca   :  { %v69_v13 = vmax.f32 %v68_v12, 1e-24 }
  0xcc   :  { %440 = vrsqrt.f32 %v69_v13 }
  0xd6   :  { %v441_v14 = vpop.eup %440 }
  0xd7   :  { %v71_v15 = vmul.f32 %v441_v14, %v65_v2 }
  0xd9   :  { %v72_v16 = vpack.c.bf16 %v71_v15, %v71_v15 }
  0xdb   :  { %392 = vmatmul.mubr.bf16.vlgmr.msra.gmra.mrb[0].mxu0 %v72_v16 }
 0x1ae   :  { %v178_v22 = vpop.f32.mrb[0].mxu0 }
 0x1af   :  { %v179_v23 = vadd.f32 %v339_v21, %v178_v22  ;;  %v393_v24 = vpop.f32.mrb[1].mxu0 }
 0x1b0   :  { %v181_v25 = vpop.f32.mrb[2].mxu0 }
 0x1b1   :  { %v184_v26 = vmax.f32 %v179_v23, 0.0  ;;  %v394_v27 = vpop.f32.mrb[3].mxu0 }
 0x1b3   :  { %v185_v28 = vpack.c.bf16 %v184_v26, %v184_v26 }
 0x1b5   :  { %186 = vst [vmem:[#allocation8] sm:$0xf] %v185_v28  ;;  %v187_v29 = vunpack.c.l.bf16 %v185_v28 }
 0x1b7   :  { %v188_v30 = vmul.f32 %v187_v29, %v187_v29 }
 0x1b9   :  { %189 = vadd.xlane.f32.xlu0 %v188_v30 }
 0x246   :  { %v190_v35 = vpop.xlane.xlu0 %189 }
 0x247   :  { %v191_v36 = vmax.f32 %v190_v35, 1e-24 }
 0x249   :  { %442 = vrsqrt.f32 %v191_v36 }
 0x253   :  { %v443_v37 = vpop.eup %442 }
 0x254   :  { %v193_v38 = vmul.f32 %v443_v37, %v187_v29 }
 0x256   :  { %v194_v39 = vpack.c.bf16 %v193_v38, %v193_v38 }
 0x258   :  { %412 = vmatmul.mubr.bf16.vlgmr.msra.gmra.mrb[0].mxu1 %v194_v39 }
 0x259   :  { %521 = shalt.err (!%p518_p0)
}
 0x25a   :  { %s522_s14 = scalar_lea.hbm %s701_s5, 64 }
 0x25b   :  { %p523_p1 = scmp.ne.s32.totalorder %s701_s5, %s522_s14  ;;  %p526_p2 = scmp.lt.u32.totalorder %s522_s14, %s701_s5 }
 0x25d   :  { %p528_p3 = pnand %p526_p2, %p523_p1 }
 0x25f   :  { %531 = shalt.err (!%p528_p3)
}
 0x260   :  { %318 = dma.vmem_to_hbm [thread:$0]  %s316_s8, 64, %s701_s5, [#allocation4]   ;;  %v348_v40 = vld [vmem:[%s700_s4] ss:$0 sm:$0xff] }
 0x261   :  { %s570_s22 = smov [#allocation9]  }
 0x262   :  { %s325_s23 = sshll.u32 %s570_s22, 4  ;;  %s326_s23 = int_to_ptr.vmem [resolvable:$true] %s325_s23 }
 0x263   :  { %s532_s24 = scalar_lea.vmem %s326_s23, 64  ;;  %p537_p5 = scmp.lt.s32.totalorder %s326_s23, %s326_s23 }
 0x264   :  { %p533_p4 = scmp.ne.s32.totalorder %s326_s23, %s532_s24  ;;  %p538_p6 = scmp.lt.s32.totalorder %s532_s24, %s532_s24 }
 0x266   :  { %p539_p7 = por %p538_p6, %p537_p5 }
 0x268   :  { %p540_p8 = pnand %p539_p7, %p533_p4 }
 0x32b   :  { %v300_v41 = vpop.f32.mrb[0].mxu1 }
 0x32c   :  { %v301_v42 = vadd.f32 %v348_v40, %v300_v41  ;;  %v413_v43 = vpop.f32.mrb[1].mxu1 }
 0x32d   :  { %v303_v44 = vpop.f32.mrb[2].mxu1 }
 0x32e   :  { %v306_v45 = vmax.f32 %v301_v42, 0.0  ;;  %v414_v46 = vpop.f32.mrb[3].mxu1 }
 0x330   :  { %v307_v47 = vpack.c.bf16 %v306_v45, %v306_v45 }
 0x332   :  { %308 = vst [vmem:[#allocation9] sm:$0xf] %v307_v47 }
 0x333   :  { %543 = shalt.err (!%p540_p8)
}
 0x334   :  { %s544_s25 = scalar_lea.hbm %s702_s6, 64 }
 0x335   :  { %p545_p9 = scmp.ne.s32.totalorder %s702_s6, %s544_s25  ;;  %p548_p10 = scmp.lt.u32.totalorder %s544_s25, %s702_s6 }
 0x337   :  { %p550_p11 = pnand %p548_p10, %p545_p9 }
 0x339   :  { %553 = shalt.err (!%p550_p11)
}
 0x33a   :  { %328 = dma.vmem_to_hbm [thread:$0]  %s326_s23, 64, %s702_s6, [#allocation10]  }
 0x33b   :  { %558 = dma.done.wait [#allocation4], 64  }
 0x33c   :  { %559 = vsyncadd [#allocation4], 4294967232 }
 0x33d   :  { %560 = dma.done.wait [#allocation10], 64  }
 0x33e   :  { %561 = vsyncadd [#allocation10], 4294967232 }
 0x33f   :  { %335 = vsyncpa [#allocation3], 1 }
 0x340   :  { %336 = vsyncpa [#allocation6], 1 }
 0x341   :  { %337 = vsyncpa [#allocation4], 1 }
 0x342   :  { %338 = vsyncpa [#allocation10], 1 }

</bundles_post_ra>
